<compile_context>
chip_gen: v6e
topology: v6e:2x2x1
jax: 0.10.0
libtpu: 0.0.40
codegen_flags: <defaults>
</compile_context>

<pallas_src>
import functools

import jax
import jax.numpy as jnp
from jax.experimental import pallas as pl
from jax.experimental.pallas import tpu as pltpu

_SUBLANE = 8


def mlp_kernel(x_ref, w1_ref, b1_ref, w2_ref, b2_ref, w3_ref, b3_ref, o_ref):
    # Cast x to bf16 in-kernel (avoids a wrapper-side HBM pass over x).
    x = x_ref[...].astype(jnp.bfloat16)
    # Layer 1: bf16 MXU matmul, f32 accumulate, f32 bias-add + tanh (EUP).
    h = jnp.dot(x, w1_ref[...], preferred_element_type=jnp.float32)
    h = jnp.tanh(h + b1_ref[...])
    # Layer 2.
    h = jnp.dot(h.astype(jnp.bfloat16), w2_ref[...],
                preferred_element_type=jnp.float32)
    h = jnp.tanh(h + b2_ref[...])
    # Output layer (Identity activation). Store only the real out_dim columns.
    o = jnp.dot(h.astype(jnp.bfloat16), w3_ref[...],
                preferred_element_type=jnp.float32)
    o_ref[...] = (o + b3_ref[...]).astype(o_ref.dtype)


def _round_up(n, m):
    return ((n + m - 1) // m) * m


@functools.partial(jax.jit, static_argnames=("block_rows",))
def mlp_forward(x, params, *, block_rows=2048):
    """Fused MLP forward. Activations never touch HBM; x/out stream through VMEM."""
    w1, b1, w2, b2, w3, b3 = params
    B, in_dim = x.shape
    h1 = w1.shape[1]
    h2 = w2.shape[1]
    out_dim = w3.shape[1]

    # --- Batch tile selection ----------------------------------------------
    tb = min(_round_up(block_rows, _SUBLANE), _round_up(B, _SUBLANE))
    # Keep >= 2 grid steps for large batches so both v7x TensorCores get work.
    if B > 2 * _SUBLANE:
        tb = min(tb, _round_up(pl.cdiv(B, 2), _SUBLANE))
    # VMEM budget: double-buffered x (f32) + out (f32) tiles + ~19 KB of weights
    # must fit the most restrictive scoped-VMEM default (16 MiB on v5e; v7x has
    # 64 MiB physical / 32 MiB scoped). Leave generous headroom.
    vmem_budget = 12 * 1024 * 1024
    bytes_per_row = 2 * 4 * (in_dim + out_dim)  # 2x buffers, f32 in + f32 out
    tb_cap = max(_SUBLANE, (vmem_budget // bytes_per_row) // _SUBLANE * _SUBLANE)
    tb = min(tb, tb_cap)
    if tb >= B:
        tb = B  # single block covering the whole (small) batch; full-dim block is legal
    num_tiles = pl.cdiv(B, tb)

    # Weights to bf16 (tiny, ~19 KB total); biases in f32.
    w1b = w1.astype(jnp.bfloat16)
    w2b = w2.astype(jnp.bfloat16)
    w3b = w3.astype(jnp.bfloat16)
    b1f = b1.astype(jnp.float32)
    b2f = b2.astype(jnp.float32)
    b3f = b3.astype(jnp.float32)

    const = lambda i: (0, 0)  # weights/biases: same block every step -> VMEM-resident
    in_specs = [
        pl.BlockSpec((tb, in_dim), lambda i: (i, 0)),   # x streams over the batch
        pl.BlockSpec((in_dim, h1), const),
        pl.BlockSpec((1, h1), const),
        pl.BlockSpec((h1, h2), const),
        pl.BlockSpec((1, h2), const),
        pl.BlockSpec((h2, out_dim), const),
        pl.BlockSpec((1, out_dim), const),
    ]
    out_specs = pl.BlockSpec((tb, out_dim), lambda i: (i, 0))

    # Honest cost model (uses out_dim, not a padded width).
    flops = 2 * B * (in_dim * h1 + h1 * h2 + h2 * out_dim)
    transcendentals = B * (h1 + h2)
    bytes_accessed = (
        B * in_dim * 4                                   # x (f32, cast in-kernel)
        + B * out_dim * 4                                # output (f32)
        + (in_dim * h1 + h1 * h2 + h2 * out_dim) * 2     # weights (bf16)
        + (h1 + h2 + out_dim) * 4                        # biases (f32)
    )

    # NOTE: on v7x, dimension_semantics=(pltpu.CORE_PARALLEL,) is a worthwhile
    # sweep once num_tiles >= 2; "parallel" is kept here for portability.
    return pl.pallas_call(
        mlp_kernel,
        out_shape=jax.ShapeDtypeStruct((B, out_dim), jnp.float32),
        grid=(num_tiles,),
        in_specs=in_specs,
        out_specs=out_specs,
        compiler_params=pltpu.CompilerParams(
            dimension_semantics=("parallel",),
        ),
        cost_estimate=pl.CostEstimate(
            flops=int(flops),
            transcendentals=int(transcendentals),
            bytes_accessed=int(bytes_accessed),
        ),
    )(x, w1b, b1f, w2b, b2f, w3b, b3f)


def init_mlp_params(key, input_dim, output_dim, hidden_units=(64, 64)):
    """Deterministic init mimicking nn.Linear default (uniform +/- 1/sqrt(fan_in))."""
    params = []
    units = input_dim
    dims = list(hidden_units) + [output_dim]
    for next_units in dims:
        key, kw, kb = jax.random.split(key, 3)
        bound = 1.0 / jnp.sqrt(units)
        w = jax.random.uniform(kw, (units, next_units), jnp.float32, -bound, bound)
        b = jax.random.uniform(kb, (1, next_units), jnp.float32, -bound, bound)
        params += [w, b]
        units = next_units
    return tuple(params)


def mlp_reference(x, params):
    w1, b1, w2, b2, w3, b3 = params
    h = jnp.tanh(x @ w1 + b1)
    h = jnp.tanh(h @ w2 + b2)
    return h @ w3 + b3


if __name__ == "__main__":
    key = jax.random.PRNGKey(0)
    key, kx = jax.random.split(key)

    batch, input_dim, output_dim = 2, 8, 4
    hidden_units = (64, 64)

    x = jax.random.normal(kx, (batch, input_dim), jnp.float32)
    params = init_mlp_params(key, input_dim, output_dim, hidden_units)

    out = mlp_forward(x, params)
    out = jax.block_until_ready(out)

    ref = mlp_reference(x, params)  # f32 reference; kernel uses bf16 MXU inputs
    assert out.shape == (batch, output_dim)
    assert jnp.allclose(out, ref, atol=3e-2, rtol=3e-2), (
        f"max abs err {jnp.max(jnp.abs(out - ref))}"
    )

    print("KERNEL_OK")
</pallas_src>

<mosaic_0001>
module attributes {stable_mosaic.version = 11 : i64} {
  func.func @mlp_kernel(%arg0: i32, %arg1: memref<2x8xf32, #tpu.memory_space<vmem>>, %arg2: memref<8x64xbf16, #tpu.memory_space<vmem>>, %arg3: memref<1x64xf32, #tpu.memory_space<vmem>>, %arg4: memref<64x64xbf16, #tpu.memory_space<vmem>>, %arg5: memref<1x64xf32, #tpu.memory_space<vmem>>, %arg6: memref<64x4xbf16, #tpu.memory_space<vmem>>, %arg7: memref<1x4xf32, #tpu.memory_space<vmem>>, %arg8: memref<2x4xf32, #tpu.memory_space<vmem>>) attributes {dimension_semantics = [#tpu.dimension_semantics<parallel>], iteration_bounds = array<i64: 1>, scalar_prefetch = 0 : i64, scratch_operands = 0 : i64, tpu.core_type = #tpu.core_type<tc>, window_params = [{transform_indices = @transform_0, window_bounds = array<i64: 2, 8>}, {pipeline_mode = #tpu.pipeline_mode<synchronous>, transform_indices = @transform_1, window_bounds = array<i64: 8, 64>}, {pipeline_mode = #tpu.pipeline_mode<synchronous>, transform_indices = @transform_2, window_bounds = array<i64: 1, 64>}, {pipeline_mode = #tpu.pipeline_mode<synchronous>, transform_indices = @transform_3, window_bounds = array<i64: 64, 64>}, {pipeline_mode = #tpu.pipeline_mode<synchronous>, transform_indices = @transform_4, window_bounds = array<i64: 1, 64>}, {pipeline_mode = #tpu.pipeline_mode<synchronous>, transform_indices = @transform_5, window_bounds = array<i64: 64, 4>}, {pipeline_mode = #tpu.pipeline_mode<synchronous>, transform_indices = @transform_6, window_bounds = array<i64: 1, 4>}, {transform_indices = @transform_7, window_bounds = array<i64: 2, 4>}]} {
    %c0 = arith.constant 0 : index
    %c0_0 = arith.constant 0 : index
    %0 = vector.load %arg1[%c0, %c0_0] : memref<2x8xf32, #tpu.memory_space<vmem>>, vector<2x8xf32>
    %1 = arith.truncf %0 : vector<2x8xf32> to vector<2x8xbf16>
    %c0_1 = arith.constant 0 : index
    %c0_2 = arith.constant 0 : index
    %2 = vector.load %arg2[%c0_1, %c0_2] : memref<8x64xbf16, #tpu.memory_space<vmem>>, vector<8x64xbf16>
    %cst = arith.constant dense<0.000000e+00> : vector<2x64xf32>
    %3 = tpu.matmul %1, %2, %cst {dimension_numbers = #tpu.dot_dimension_numbers<[1], [0], [0], [1], [0, 0, 1, 1], [], []>} : vector<2x8xbf16>, vector<8x64xbf16>, vector<2x64xf32> -> vector<2x64xf32>
    %c0_3 = arith.constant 0 : index
    %c0_4 = arith.constant 0 : index
    %4 = vector.load %arg3[%c0_3, %c0_4] : memref<1x64xf32, #tpu.memory_space<vmem>>, vector<1x64xf32>
    %5 = vector.broadcast %4 : vector<1x64xf32> to vector<2x64xf32>
    %6 = arith.addf %3, %5 : vector<2x64xf32>
    %7 = math.tanh %6 : vector<2x64xf32>
    %8 = arith.truncf %7 : vector<2x64xf32> to vector<2x64xbf16>
    %c0_5 = arith.constant 0 : index
    %c0_6 = arith.constant 0 : index
    %9 = vector.load %arg4[%c0_5, %c0_6] : memref<64x64xbf16, #tpu.memory_space<vmem>>, vector<64x64xbf16>
    %cst_7 = arith.constant dense<0.000000e+00> : vector<2x64xf32>
    %10 = tpu.matmul %8, %9, %cst_7 {dimension_numbers = #tpu.dot_dimension_numbers<[1], [0], [0], [1], [0, 0, 1, 1], [], []>} : vector<2x64xbf16>, vector<64x64xbf16>, vector<2x64xf32> -> vector<2x64xf32>
    %c0_8 = arith.constant 0 : index
    %c0_9 = arith.constant 0 : index
    %11 = vector.load %arg5[%c0_8, %c0_9] : memref<1x64xf32, #tpu.memory_space<vmem>>, vector<1x64xf32>
    %12 = vector.broadcast %11 : vector<1x64xf32> to vector<2x64xf32>
    %13 = arith.addf %10, %12 : vector<2x64xf32>
    %14 = math.tanh %13 : vector<2x64xf32>
    %15 = arith.truncf %14 : vector<2x64xf32> to vector<2x64xbf16>
    %c0_10 = arith.constant 0 : index
    %c0_11 = arith.constant 0 : index
    %16 = vector.load %arg6[%c0_10, %c0_11] : memref<64x4xbf16, #tpu.memory_space<vmem>>, vector<64x4xbf16>
    %cst_12 = arith.constant dense<0.000000e+00> : vector<2x4xf32>
    %17 = tpu.matmul %15, %16, %cst_12 {dimension_numbers = #tpu.dot_dimension_numbers<[1], [0], [0], [1], [0, 0, 1, 1], [], []>} : vector<2x64xbf16>, vector<64x4xbf16>, vector<2x4xf32> -> vector<2x4xf32>
    %c0_13 = arith.constant 0 : index
    %c0_14 = arith.constant 0 : index
    %18 = vector.load %arg7[%c0_13, %c0_14] : memref<1x4xf32, #tpu.memory_space<vmem>>, vector<1x4xf32>
    %19 = vector.broadcast %18 : vector<1x4xf32> to vector<2x4xf32>
    %20 = arith.addf %17, %19 : vector<2x4xf32>
    %c0_15 = arith.constant 0 : index
    %c0_16 = arith.constant 0 : index
    %21 = vector.load %arg8[%c0_15, %c0_16] : memref<2x4xf32, #tpu.memory_space<vmem>>, vector<2x4xf32>
    tpu.vector_store %arg8[%c0_15, %c0_16], %20 {strides = array<i32>} : memref<2x4xf32, #tpu.memory_space<vmem>>, vector<2x4xf32>,
    return
  }
  func.func @transform_0(%arg0: i32) -> (i32, i32) {
    %c0_i32 = arith.constant 0 : i32
    %c0_i32_0 = arith.constant 0 : i32
    return %arg0, %c0_i32 : i32, i32
  }
  func.func @transform_1(%arg0: i32) -> (i32, i32) {
    %c0_i32 = arith.constant 0 : i32
    %c0_i32_0 = arith.constant 0 : i32
    %c0_i32_1 = arith.constant 0 : i32
    return %c0_i32, %c0_i32_0 : i32, i32
  }
  func.func @transform_2(%arg0: i32) -> (i32, i32) {
    %c0_i32 = arith.constant 0 : i32
    %c0_i32_0 = arith.constant 0 : i32
    %c0_i32_1 = arith.constant 0 : i32
    return %c0_i32, %c0_i32_0 : i32, i32
  }
  func.func @transform_3(%arg0: i32) -> (i32, i32) {
    %c0_i32 = arith.constant 0 : i32
    %c0_i32_0 = arith.constant 0 : i32
    %c0_i32_1 = arith.constant 0 : i32
    return %c0_i32, %c0_i32_0 : i32, i32
  }
  func.func @transform_4(%arg0: i32) -> (i32, i32) {
    %c0_i32 = arith.constant 0 : i32
    %c0_i32_0 = arith.constant 0 : i32
    %c0_i32_1 = arith.constant 0 : i32
    return %c0_i32, %c0_i32_0 : i32, i32
  }
  func.func @transform_5(%arg0: i32) -> (i32, i32) {
    %c0_i32 = arith.constant 0 : i32
    %c0_i32_0 = arith.constant 0 : i32
    %c0_i32_1 = arith.constant 0 : i32
    return %c0_i32, %c0_i32_0 : i32, i32
  }
  func.func @transform_6(%arg0: i32) -> (i32, i32) {
    %c0_i32 = arith.constant 0 : i32
    %c0_i32_0 = arith.constant 0 : i32
    %c0_i32_1 = arith.constant 0 : i32
    return %c0_i32, %c0_i32_0 : i32, i32
  }
  func.func @transform_7(%arg0: i32) -> (i32, i32) {
    %c0_i32 = arith.constant 0 : i32
    %c0_i32_0 = arith.constant 0 : i32
    return %arg0, %c0_i32 : i32, i32
  }
}

</mosaic_0001>

<bundles_post_ra>
// kernel: mlp_forward.1
= control target key start
LH: loop header
LB: loop body
LE: loop exit
PB: predicated region body
PF: predicated region fallthrough
CT: control target
= control target key end

     0   :  { %vm42_vm0 = vcmask 1043456   ;;  %v364_v1 = vmov 0.0   ;;  %vm365_vm1 = vmmov 0   ;;  %vm38_vm2 = vcmask 64512   ;;  %s451_s0 = inlined_call_operand.vmem [shape: f32[2,8], index: 0, kind: input, shape index: {}]   ;;  %s452_s1 = inlined_call_operand.vmem [shape: bf16[8,64], index: 1, kind: input, shape index: {}]   ;;  %s453_s2 = inlined_call_operand.vmem [shape: f32[1,64], index: 2, kind: input, shape index: {}]   ;;  %s454_s3 = inlined_call_operand.vmem [shape: bf16[64,64], index: 3, kind: input, shape index: {}]   ;;  %s455_s4 = inlined_call_operand.vmem [shape: f32[1,64], index: 4, kind: input, shape index: {}]   ;;  %s456_s5 = inlined_call_operand.vmem [shape: bf16[64,4], index: 5, kind: input, shape index: {}]   ;;  %s457_s6 = inlined_call_operand.vmem [shape: f32[1,4], index: 6, kind: input, shape index: {}]   ;;  %s458_s7 = inlined_call_operand.hbm [shape: f32[2,4], index: 7, kind: output, shape index: {}]  }
   0x1   :  { %v30_v0 = vld [vmem:[%s452_s1] sm:$0xf]  ;;  %297 = vmatprep.subr.bf16.mxu0 %v364_v1  ;;  %299 = vmatprep.mubr.msk.bf16.mxu0 %vm365_vm1, %v364_v1 }
   0x2   :  { %v44_v2 = vsel %vm42_vm0, %v30_v0, 0  ;;  %v28_v3 = vld [vmem:[%s451_s0] sm:$0x3]  ;;  %303 = vmatprep.subr.bf16.mxu1 %v364_v1  ;;  %311 = vmatprep.mubr.msk.bf16.mxu1 %vm365_vm1, %v364_v1 }
   0x3   :  { %298 = vmatpush3.bf16.msra.mxu0 %v44_v2  ;;  %v29_v4 = vpack.c.bf16 %v28_v3, %v28_v3 }
   0x4   :  { %315 = vmatprep.subr.bf16.mxu0 %v364_v1 }
   0x6   :  { %300 = vmatmul.mubr.msk.bf16.vlgmr.msra.gmra.mxu0 %vm38_vm2, %v29_v4 }
   0x7   :  { %323 = vmatprep.mubr.msk.bf16.mxu0 %vm365_vm1, %v364_v1 }
   0x8   :  { %12 = vsyncpa [#allocation3], 0  ;;  %v330_v5 = vld [vmem:[%s454_s3 + $0x18] sm:$0xff]   ;;  %v331_v6 = vld [vmem:[%s454_s3 + $0x10] sm:$0xff]   ;;  %vm127_vm3 = vcmask 523264   ;;  %vm255_vm4 = vcmask 25600  }
   0x9   :  { %304 = vmatpush3.bf16.msra.mxu1 %v330_v5  ;;  %v332_v7 = vld [vmem:[%s454_s3 + $0x8] sm:$0xff]   ;;  %v333_v8 = vld [vmem:[%s454_s3] sm:$0xff]   ;;  %v334_v17 = vld [vmem:[%s456_s5 + $0x18] sm:$0xff]  }
   0xa   :  { %305 = vmatprep.subr.bf16.mxu1 %v364_v1  ;;  %v271_v9 = vld [vmem:[%s453_s2] ss:$0 sm:$0xff]  ;;  %316 = vmatpush3.bf16.msra.mxu0 %v334_v17  ;;  %v335_v18 = vld [vmem:[%s456_s5 + $0x10] sm:$0xff]   ;;  %v336_v19 = vld [vmem:[%s456_s5 + $0x8] sm:$0xff]  }
   0xb   :  { %317 = vmatprep.subr.bf16.mxu0 %v364_v1  ;;  %v337_v20 = vld [vmem:[%s456_s5] sm:$0xff]   ;;  %s366_s5 = smov [#allocation2]  }
   0xc   :  { %v273_v21 = vld [vmem:[%s455_s4] ss:$0 sm:$0xff]  ;;  %s263_s23 = sshll.u32 %s366_s5, 4  ;;  %s264_s23 = int_to_ptr.vmem [resolvable:$true] %s263_s23 }
   0xd   :  { %306 = vmatpush3.bf16.msra.mxu1 %v331_v6  ;;  %v279_v29 = vld [vmem:[%s457_s6] ss:$0 sm:$0xff]  ;;  %s342_s4 = scalar_lea.vmem %s264_s23, 32  ;;  %p347_p1 = scmp.lt.s32.totalorder %s264_s23, %s264_s23 }
   0xe   :  { %307 = vmatprep.subr.bf16.mxu1 %v364_v1  ;;  %318 = vmatpush3.bf16.msra.mxu0 %v335_v18  ;;  %p343_p0 = scmp.ne.s32.totalorder %s264_s23, %s342_s4  ;;  %p348_p2 = scmp.lt.s32.totalorder %s342_s4, %s342_s4 }
   0xf   :  { %319 = vmatprep.subr.bf16.mxu0 %v364_v1 }
  0x10   :  { %p349_p3 = por %p348_p2, %p347_p1 }
  0x11   :  { %308 = vmatpush3.bf16.msra.mxu1 %v332_v7 }
  0x12   :  { %309 = vmatprep.subr.bf16.mxu1 %v364_v1  ;;  %320 = vmatpush3.bf16.msra.mxu0 %v336_v19  ;;  %p350_p4 = pnand %p349_p3, %p343_p0 }
  0x13   :  { %321 = vmatprep.subr.bf16.mxu0 %v364_v1 }
  0x15   :  { %310 = vmatpush3.bf16.msra.mxu1 %v333_v8 }
  0x16   :  { %322 = vmatpush3.bf16.msra.mxu0 %v337_v20 }
  0xc6   :  { %v80_v10 = vpop.f32.mrf.mxu0 }
  0xc7   :  { %v81_v11 = vadd.f32 %v271_v9, %v80_v10 }
  0xc8   :  { %v301_v12 = vpop.f32.mrf.mxu0 }
  0xc9   :  { %338 = vtanh.f32 %v81_v11 }
  0xca   :  { %v83_v13 = vpop.f32.mrf.mxu0 }
  0xcc   :  { %v302_v14 = vpop.f32.mrf.mxu0 }
  0xd6   :  { %v339_v15 = vpop.eup %338 }
  0xd7   :  { %v87_v16 = vpack.c.bf16 %v339_v15, %v339_v15 }
  0xd9   :  { %312 = vmatmul.mubr.msk.bf16.vlgmr.msra.gmra.mxu1 %vm127_vm3, %v87_v16 }
 0x199   :  { %v165_v22 = vpop.f32.mrf.mxu1 }
 0x19a   :  { %v166_v23 = vadd.f32 %v273_v21, %v165_v22 }
 0x19b   :  { %v313_v24 = vpop.f32.mrf.mxu1 }
 0x19c   :  { %340 = vtanh.f32 %v166_v23 }
 0x19d   :  { %v168_v25 = vpop.f32.mrf.mxu1 }
 0x19f   :  { %v314_v26 = vpop.f32.mrf.mxu1 }
 0x1a9   :  { %v341_v27 = vpop.eup %340 }
 0x1aa   :  { %v172_v28 = vpack.c.bf16 %v341_v27, %v341_v27 }
 0x1ac   :  { %324 = vmatmul.mubr.msk.bf16.vlgmr.msra.gmra.mxu0 %vm127_vm3, %v172_v28 }
 0x26c   :  { %v249_v30 = vpop.f32.mrf.mxu0 }
 0x26d   :  { %v250_v31 = vadd.f32 %v279_v29, %v249_v30 }
 0x26e   :  { %v325_v32 = vpop.f32.mrf.mxu0 }
 0x26f   :  { %256 = vst.msk [vmem:[#allocation2] sm:$0x3] %vm255_vm4, %v250_v31 }
 0x270   :  { %v252_v33 = vpop.f32.mrf.mxu0 }
 0x271   :  { %353 = shalt.err (!%p350_p4)
}
 0x272   :  { %266 = dma.vmem_to_hbm [thread:$0]  %s264_s23, 32, %s458_s7, [#allocation3]   ;;  %v326_v34 = vpop.f32.mrf.mxu0 }
 0x273   :  { %362 = dma.done.wait [#allocation3], 32  }
 0x274   :  { %363 = vsyncadd [#allocation3], 4294967264 }
 0x275   :  { %270 = vsyncpa [#allocation3], 1 }

</bundles_post_ra>
